<compile_context>
chip_gen: v5e
topology: v5e:2x2
jax: 0.10.0
libtpu: 0.0.40
codegen_flags: <defaults>
</compile_context>

<pallas_src>
import math
import functools

import jax
import jax.numpy as jnp
from jax import lax
from jax.experimental import pallas as pl
from jax.experimental.pallas import tpu as pltpu


# ------------------------------ tiling helpers -------------------------------

def _pick_tile(dim, preferred, minimum):
    """Largest power-of-two tile <= preferred (>= minimum) dividing dim, else dim."""
    t = preferred
    while t >= minimum:
        if t <= dim and dim % t == 0:
            return t
        t //= 2
    return dim


_VMEM_LIMIT = 32 * 1024 * 1024  # safe on v5e/v6e/v7x scoped VMEM


# ------------------------------ Pallas kernels -------------------------------

def _linear_kernel(x_ref, w_ref, b_ref, o_ref):
    # x: (tn, Din), w: (Din, Dout), b: (1, Dout) -> o: (tn, Dout)
    acc = jnp.dot(x_ref[...], w_ref[...], preferred_element_type=jnp.float32)
    o_ref[...] = (acc + b_ref[...].astype(jnp.float32)).astype(o_ref.dtype)


def _qkv_proj_kernel(xq_ref, xk_ref, xv_ref, w_ref, b_ref, o_ref):
    # xq/xk/xv: (tn, Din); w: (3, Din, D); b: (3, 1, D); o: (3, tn, D)
    def proj(x_ref, idx):
        acc = jnp.dot(x_ref[...], w_ref[idx], preferred_element_type=jnp.float32)
        return (acc + b_ref[idx].astype(jnp.float32)).astype(o_ref.dtype)

    o_ref[0] = proj(xq_ref, 0)
    o_ref[1] = proj(xk_ref, 1)
    o_ref[2] = proj(xv_ref, 2)


def _flash_attention_kernel(q_ref, k_ref, v_ref, mask_ref, o_ref,
                            m_sc, l_sc, acc_sc, *, scale):
    # q: (tq, dk); k/v: (tk, dk); mask: (tq, tk) int8 (nonzero = masked out)
    kv = pl.program_id(3)

    @pl.when(kv == 0)
    def _():
        m_sc[...] = jnp.full_like(m_sc, -jnp.inf)
        l_sc[...] = jnp.zeros_like(l_sc)
        acc_sc[...] = jnp.zeros_like(acc_sc)

    q = q_ref[...]                      # native dtype feeds the MXU directly
    k = k_ref[...]
    v = v_ref[...]

    # Q K^T without an explicit transpose: contract the dk axes directly.
    s = lax.dot_general(q, k, (((1,), (1,)), ((), ())),
                        preferred_element_type=jnp.float32) * scale
    s = jnp.where(mask_ref[...] != 0, jnp.float32(-1.0e9), s)

    # Online (flash) softmax update; all state in f32.
    m_prev = m_sc[...]
    m_new = jnp.maximum(m_prev, jnp.max(s, axis=-1, keepdims=True))
    alpha = jnp.exp(m_prev - m_new)
    p = jnp.exp(s - m_new)
    l_sc[...] = alpha * l_sc[...] + jnp.sum(p, axis=-1, keepdims=True)
    acc_sc[...] = alpha * acc_sc[...] + jnp.dot(
        p.astype(v.dtype), v, preferred_element_type=jnp.float32)
    m_sc[...] = m_new

    @pl.when(kv == pl.num_programs(3) - 1)
    def _():
        inv_l = pl.reciprocal(l_sc[...], approx=True)
        o_ref[...] = (acc_sc[...] * inv_l).astype(o_ref.dtype)


# -------------------------------- wrappers -----------------------------------

def pallas_linear(x2d, w, b, *, row_tile=256):
    """x2d: (N, Din), w: (Din, Dout), b: (Dout,) -> (N, Dout), row-tiled."""
    N, Din = x2d.shape
    Dout = w.shape[1]
    tn = _pick_tile(N, row_tile, minimum=16)
    itemsize = jnp.dtype(x2d.dtype).itemsize
    cost = pl.CostEstimate(
        flops=2 * N * Din * Dout,
        transcendentals=0,
        bytes_accessed=int((N * Din + Din * Dout + Dout + N * Dout) * itemsize),
    )
    return pl.pallas_call(
        _linear_kernel,
        out_shape=jax.ShapeDtypeStruct((N, Dout), x2d.dtype),
        grid_spec=pltpu.PrefetchScalarGridSpec(
            num_scalar_prefetch=0,
            grid=(N // tn,),
            in_specs=[
                pl.BlockSpec((tn, Din), lambda i: (i, 0)),     # row tile of x
                pl.BlockSpec((Din, Dout), lambda i: (0, 0)),   # resident weight
                pl.BlockSpec((1, Dout), lambda i: (0, 0)),     # resident bias
            ],
            out_specs=pl.BlockSpec((tn, Dout), lambda i: (i, 0)),
        ),
        compiler_params=pltpu.CompilerParams(
            dimension_semantics=("parallel",),
            vmem_limit_bytes=_VMEM_LIMIT,
        ),
        cost_estimate=cost,
    )(x2d, w, b.reshape(1, Dout))


def pallas_qkv_proj(q2d, k2d, v2d, w3, b3, *, row_tile=256):
    """Fused Q/K/V projection.

    q2d/k2d/v2d: (N, Din); w3: (3, Din, D); b3: (3, 1, D) -> (3, N, D).
    One launch; the stacked weights/biases stay VMEM-resident across row tiles.
    """
    N, Din = q2d.shape
    D = w3.shape[2]
    tn = _pick_tile(N, row_tile, minimum=16)
    itemsize = jnp.dtype(q2d.dtype).itemsize
    cost = pl.CostEstimate(
        flops=3 * 2 * N * Din * D,
        transcendentals=0,
        bytes_accessed=int((3 * N * Din + 3 * Din * D + 3 * D + 3 * N * D) * itemsize),
    )
    x_spec = pl.BlockSpec((tn, Din), lambda i: (i, 0))
    return pl.pallas_call(
        _qkv_proj_kernel,
        out_shape=jax.ShapeDtypeStruct((3, N, D), q2d.dtype),
        grid_spec=pltpu.PrefetchScalarGridSpec(
            num_scalar_prefetch=0,
            grid=(N // tn,),
            in_specs=[
                x_spec, x_spec, x_spec,
                pl.BlockSpec((3, Din, D), lambda i: (0, 0, 0)),  # resident weights
                pl.BlockSpec((3, 1, D), lambda i: (0, 0, 0)),    # resident biases
            ],
            out_specs=pl.BlockSpec((3, tn, D), lambda i: (0, i, 0)),
        ),
        compiler_params=pltpu.CompilerParams(
            dimension_semantics=("parallel",),
            vmem_limit_bytes=_VMEM_LIMIT,
        ),
        cost_estimate=cost,
    )(q2d, k2d, v2d, w3, b3)


def pallas_attention(Q, K, V, mask_i8, scale, *, q_tile=256, kv_tile=256):
    """Flash-style attention.

    Q/K/V: (B, H, S, dk); mask_i8: (B, S, S) int8 (nonzero = masked out).
    Returns (B, H, S, dk).  Per-step VMEM is O(tq*tk + tq*dk + tk*dk).
    Note: 256-edge tiles suit the v6e/v7x MXU; v5e prefers 128 (still correct).
    """
    B, H, S, dk = Q.shape
    tq = _pick_tile(S, q_tile, minimum=128)
    tk = _pick_tile(S, kv_tile, minimum=128)
    n_q, n_kv = S // tq, S // tk

    # `None` block dims are squeezed out of the kernel Refs.
    q_spec = pl.BlockSpec((None, None, tq, dk), lambda b, h, qi, ki: (b, h, qi, 0))
    kv_spec = pl.BlockSpec((None, None, tk, dk), lambda b, h, qi, ki: (b, h, ki, 0))
    mask_spec = pl.BlockSpec((None, tq, tk), lambda b, h, qi, ki: (b, qi, ki))
    out_spec = pl.BlockSpec((None, None, tq, dk), lambda b, h, qi, ki: (b, h, qi, 0))

    itemsize = jnp.dtype(Q.dtype).itemsize
    cost = pl.CostEstimate(
        flops=4 * B * H * S * S * dk,            # QK^T and PV matmuls
        transcendentals=B * H * S * S,           # exp
        bytes_accessed=int(4 * B * H * S * dk * itemsize + B * S * S),
    )

    kernel = functools.partial(_flash_attention_kernel, scale=scale)
    return pl.pallas_call(
        kernel,
        out_shape=jax.ShapeDtypeStruct((B, H, S, dk), Q.dtype),
        grid_spec=pltpu.PrefetchScalarGridSpec(
            num_scalar_prefetch=0,
            grid=(B, H, n_q, n_kv),
            in_specs=[q_spec, kv_spec, kv_spec, mask_spec],
            out_specs=out_spec,
            scratch_shapes=[
                pltpu.VMEM((tq, 1), jnp.float32),    # running max m
                pltpu.VMEM((tq, 1), jnp.float32),    # running denom l
                pltpu.VMEM((tq, dk), jnp.float32),   # running numerator acc
            ],
        ),
        compiler_params=pltpu.CompilerParams(
            # B/H/Q-block axes shard across TensorCores (megacore); only the
            # KV reduction axis is sequential.
            dimension_semantics=("parallel", "parallel", "parallel", "arbitrary"),
            vmem_limit_bytes=_VMEM_LIMIT,
        ),
        cost_estimate=cost,
    )(Q, K, V, mask_i8)


def multi_head_attention(q, k, v, mask, params, num_head):
    """Forward pass matching the PyTorch MultiHeadAttention module (eval mode)."""
    B, S, D = q.shape
    dk = D // num_head
    scale = 1.0 / math.sqrt(dk)

    # Fused QKV projection (one launch; weights stacked (3, D, D)).
    w3 = jnp.stack([params["wq_w"], params["wk_w"], params["wv_w"]], axis=0)
    b3 = jnp.stack([params["wq_b"], params["wk_b"], params["wv_b"]], axis=0)
    b3 = b3.reshape(3, 1, D)
    qkv = pallas_qkv_proj(q.reshape(B * S, D), k.reshape(B * S, D),
                          v.reshape(B * S, D), w3, b3)          # (3, B*S, D)

    # Single host-side head split/transpose for all three tensors.
    qkv = qkv.reshape(3, B, S, num_head, dk).transpose(0, 1, 3, 2, 4)
    Q, K, V = qkv[0], qkv[1], qkv[2]                            # (B, H, S, dk)

    # int8 mask (B, S, S), broadcast over heads via the BlockSpec index_map.
    mask_i8 = mask[:, 0].astype(jnp.int8)

    x = pallas_attention(Q, K, V, mask_i8, scale)               # (B, H, S, dk)

    # dropout on attn weights: identity in eval mode.
    x = x.transpose(0, 2, 1, 3).reshape(B * S, num_head * dk)
    out = pallas_linear(x, params["fc_w"], params["fc_b"])
    return out.reshape(B, S, D)


# -------------------------------- reference ----------------------------------

def multi_head_attention_ref(q, k, v, mask, params, num_head):
    B, S, D = q.shape
    dk = D // num_head

    def linear(x, name):
        return x @ params[name + "_w"] + params[name + "_b"]

    Q = linear(q, "wq").reshape(B, S, num_head, dk).transpose(0, 2, 1, 3)
    K = linear(k, "wk").reshape(B, S, num_head, dk).transpose(0, 2, 1, 3)
    V = linear(v, "wv").reshape(B, S, num_head, dk).transpose(0, 2, 1, 3)
    score = jnp.einsum("bhqd,bhkd->bhqk", Q, K) / math.sqrt(dk)
    score = jnp.where(mask, -1.0e9, score)
    attn = jax.nn.softmax(score, axis=-1)
    x = jnp.einsum("bhqk,bhkd->bhqd", attn, V)
    x = x.transpose(0, 2, 1, 3).reshape(B, S, D)
    return linear(x, "fc")


# ---------------------------------- main --------------------------------------

if __name__ == "__main__":
    B, S, d_model, num_head = 2, 8, 32, 4
    dropout = 0.1  # unused in eval-mode forward

    key = jax.random.PRNGKey(0)
    keys = jax.random.split(key, 12)

    def init_linear(kw, kb, din, dout):
        bound = 1.0 / math.sqrt(din)
        w = jax.random.uniform(kw, (din, dout), jnp.float32, -bound, bound)
        b = jax.random.uniform(kb, (dout,), jnp.float32, -bound, bound)
        return w, b

    params = {}
    for i, name in enumerate(["wq", "wk", "wv", "fc"]):
        w, b = init_linear(keys[2 * i], keys[2 * i + 1], d_model, d_model)
        params[name + "_w"] = w
        params[name + "_b"] = b

    q = jax.random.normal(keys[8], (B, S, d_model), jnp.float32)
    k = jax.random.normal(keys[9], (B, S, d_model), jnp.float32)
    v = jax.random.normal(keys[10], (B, S, d_model), jnp.float32)
    # causal-style boolean mask, True = masked out, broadcast over heads
    mask = jnp.triu(jnp.ones((S, S), dtype=jnp.bool_), k=1)[None, None, :, :]
    mask = jnp.broadcast_to(mask, (B, 1, S, S))

    out = multi_head_attention(q, k, v, mask, params, num_head)
    out = jax.block_until_ready(out)

    ref = multi_head_attention_ref(q, k, v, mask, params, num_head)
    assert out.shape == (B, S, d_model)
    # Tolerance slightly looser than exact f32 because of the approximate (EUP)
    # reciprocal in the softmax finalize.
    assert jnp.allclose(out, ref, atol=2e-3, rtol=2e-3), float(
        jnp.max(jnp.abs(out - ref)))

    print("KERNEL_OK")
</pallas_src>

<mosaic_0001>
module attributes {stable_mosaic.version = 11 : i64} {
  func.func @_qkv_proj_kernel(%arg0: i32, %arg1: memref<16x32xf32, #tpu.memory_space<vmem>>, %arg2: memref<16x32xf32, #tpu.memory_space<vmem>>, %arg3: memref<16x32xf32, #tpu.memory_space<vmem>>, %arg4: memref<3x32x32xf32, #tpu.memory_space<vmem>>, %arg5: memref<3x1x32xf32, #tpu.memory_space<vmem>>, %arg6: memref<3x16x32xf32, #tpu.memory_space<vmem>>) attributes {dimension_semantics = [#tpu.dimension_semantics<parallel>], iteration_bounds = array<i64: 1>, scalar_prefetch = 0 : i64, scratch_operands = 0 : i64, tpu.core_type = #tpu.core_type<tc>, window_params = [{transform_indices = @transform_0, window_bounds = array<i64: 16, 32>}, {transform_indices = @transform_1, window_bounds = array<i64: 16, 32>}, {transform_indices = @transform_2, window_bounds = array<i64: 16, 32>}, {pipeline_mode = #tpu.pipeline_mode<synchronous>, transform_indices = @transform_3, window_bounds = array<i64: 3, 32, 32>}, {pipeline_mode = #tpu.pipeline_mode<synchronous>, transform_indices = @transform_4, window_bounds = array<i64: 3, 1, 32>}, {transform_indices = @transform_5, window_bounds = array<i64: 3, 16, 32>}]} {
    %c0 = arith.constant 0 : index
    %c0_0 = arith.constant 0 : index
    %0 = vector.load %arg1[%c0, %c0_0] : memref<16x32xf32, #tpu.memory_space<vmem>>, vector<16x32xf32>
    %c0_1 = arith.constant 0 : index
    %c0_2 = arith.constant 0 : index
    %c0_3 = arith.constant 0 : index
    %1 = vector.load %arg4[%c0_1, %c0_2, %c0_3] : memref<3x32x32xf32, #tpu.memory_space<vmem>>, vector<1x32x32xf32>
    %2 = vector.shape_cast %1 : vector<1x32x32xf32> to vector<32x32xf32>
    %cst = arith.constant dense<0.000000e+00> : vector<16x32xf32>
    %3 = tpu.matmul %0, %2, %cst {dimension_numbers = #tpu.dot_dimension_numbers<[1], [0], [0], [1], [0, 0, 1, 1], [], []>} : vector<16x32xf32>, vector<32x32xf32>, vector<16x32xf32> -> vector<16x32xf32>
    %c0_4 = arith.constant 0 : index
    %c0_5 = arith.constant 0 : index
    %c0_6 = arith.constant 0 : index
    %4 = vector.load %arg5[%c0_4, %c0_5, %c0_6] : memref<3x1x32xf32, #tpu.memory_space<vmem>>, vector<1x1x32xf32>
    %5 = vector.shape_cast %4 : vector<1x1x32xf32> to vector<1x32xf32>
    %6 = vector.broadcast %5 : vector<1x32xf32> to vector<16x32xf32>
    %7 = arith.addf %3, %6 : vector<16x32xf32>
    %c0_7 = arith.constant 0 : index
    %c0_8 = arith.constant 0 : index
    %c0_9 = arith.constant 0 : index
    %8 = vector.load %arg6[%c0_7, %c0_8, %c0_9] : memref<3x16x32xf32, #tpu.memory_space<vmem>>, vector<1x16x32xf32>
    %9 = vector.shape_cast %8 : vector<1x16x32xf32> to vector<16x32xf32>
    %10 = vector.shape_cast %7 : vector<16x32xf32> to vector<1x16x32xf32>
    tpu.vector_store %arg6[%c0_7, %c0_8, %c0_9], %10 {strides = array<i32>} : memref<3x16x32xf32, #tpu.memory_space<vmem>>, vector<1x16x32xf32>,
    %c0_10 = arith.constant 0 : index
    %c0_11 = arith.constant 0 : index
    %11 = vector.load %arg2[%c0_10, %c0_11] : memref<16x32xf32, #tpu.memory_space<vmem>>, vector<16x32xf32>
    %c1 = arith.constant 1 : index
    %c0_12 = arith.constant 0 : index
    %c0_13 = arith.constant 0 : index
    %12 = vector.load %arg4[%c1, %c0_12, %c0_13] : memref<3x32x32xf32, #tpu.memory_space<vmem>>, vector<1x32x32xf32>
    %13 = vector.shape_cast %12 : vector<1x32x32xf32> to vector<32x32xf32>
    %cst_14 = arith.constant dense<0.000000e+00> : vector<16x32xf32>
    %14 = tpu.matmul %11, %13, %cst_14 {dimension_numbers = #tpu.dot_dimension_numbers<[1], [0], [0], [1], [0, 0, 1, 1], [], []>} : vector<16x32xf32>, vector<32x32xf32>, vector<16x32xf32> -> vector<16x32xf32>
    %c1_15 = arith.constant 1 : index
    %c0_16 = arith.constant 0 : index
    %c0_17 = arith.constant 0 : index
    %15 = vector.load %arg5[%c1_15, %c0_16, %c0_17] : memref<3x1x32xf32, #tpu.memory_space<vmem>>, vector<1x1x32xf32>
    %16 = vector.shape_cast %15 : vector<1x1x32xf32> to vector<1x32xf32>
    %17 = vector.broadcast %16 : vector<1x32xf32> to vector<16x32xf32>
    %18 = arith.addf %14, %17 : vector<16x32xf32>
    %c1_18 = arith.constant 1 : index
    %c0_19 = arith.constant 0 : index
    %c0_20 = arith.constant 0 : index
    %19 = vector.load %arg6[%c1_18, %c0_19, %c0_20] : memref<3x16x32xf32, #tpu.memory_space<vmem>>, vector<1x16x32xf32>
    %20 = vector.shape_cast %19 : vector<1x16x32xf32> to vector<16x32xf32>
    %21 = vector.shape_cast %18 : vector<16x32xf32> to vector<1x16x32xf32>
    tpu.vector_store %arg6[%c1_18, %c0_19, %c0_20], %21 {strides = array<i32>} : memref<3x16x32xf32, #tpu.memory_space<vmem>>, vector<1x16x32xf32>,
    %c0_21 = arith.constant 0 : index
    %c0_22 = arith.constant 0 : index
    %22 = vector.load %arg3[%c0_21, %c0_22] : memref<16x32xf32, #tpu.memory_space<vmem>>, vector<16x32xf32>
    %c2 = arith.constant 2 : index
    %c0_23 = arith.constant 0 : index
    %c0_24 = arith.constant 0 : index
    %23 = vector.load %arg4[%c2, %c0_23, %c0_24] : memref<3x32x32xf32, #tpu.memory_space<vmem>>, vector<1x32x32xf32>
    %24 = vector.shape_cast %23 : vector<1x32x32xf32> to vector<32x32xf32>
    %cst_25 = arith.constant dense<0.000000e+00> : vector<16x32xf32>
    %25 = tpu.matmul %22, %24, %cst_25 {dimension_numbers = #tpu.dot_dimension_numbers<[1], [0], [0], [1], [0, 0, 1, 1], [], []>} : vector<16x32xf32>, vector<32x32xf32>, vector<16x32xf32> -> vector<16x32xf32>
    %c2_26 = arith.constant 2 : index
    %c0_27 = arith.constant 0 : index
    %c0_28 = arith.constant 0 : index
    %26 = vector.load %arg5[%c2_26, %c0_27, %c0_28] : memref<3x1x32xf32, #tpu.memory_space<vmem>>, vector<1x1x32xf32>
    %27 = vector.shape_cast %26 : vector<1x1x32xf32> to vector<1x32xf32>
    %28 = vector.broadcast %27 : vector<1x32xf32> to vector<16x32xf32>
    %29 = arith.addf %25, %28 : vector<16x32xf32>
    %c2_29 = arith.constant 2 : index
    %c0_30 = arith.constant 0 : index
    %c0_31 = arith.constant 0 : index
    %30 = vector.load %arg6[%c2_29, %c0_30, %c0_31] : memref<3x16x32xf32, #tpu.memory_space<vmem>>, vector<1x16x32xf32>
    %31 = vector.shape_cast %30 : vector<1x16x32xf32> to vector<16x32xf32>
    %32 = vector.shape_cast %29 : vector<16x32xf32> to vector<1x16x32xf32>
    tpu.vector_store %arg6[%c2_29, %c0_30, %c0_31], %32 {strides = array<i32>} : memref<3x16x32xf32, #tpu.memory_space<vmem>>, vector<1x16x32xf32>,
    return
  }
  func.func @transform_0(%arg0: i32) -> (i32, i32) {
    %c0_i32 = arith.constant 0 : i32
    %c0_i32_0 = arith.constant 0 : i32
    return %arg0, %c0_i32 : i32, i32
  }
  func.func @transform_1(%arg0: i32) -> (i32, i32) {
    %c0_i32 = arith.constant 0 : i32
    %c0_i32_0 = arith.constant 0 : i32
    return %arg0, %c0_i32 : i32, i32
  }
  func.func @transform_2(%arg0: i32) -> (i32, i32) {
    %c0_i32 = arith.constant 0 : i32
    %c0_i32_0 = arith.constant 0 : i32
    return %arg0, %c0_i32 : i32, i32
  }
  func.func @transform_3(%arg0: i32) -> (i32, i32, i32) {
    %c0_i32 = arith.constant 0 : i32
    %c0_i32_0 = arith.constant 0 : i32
    %c0_i32_1 = arith.constant 0 : i32
    %c0_i32_2 = arith.constant 0 : i32
    return %c0_i32, %c0_i32_0, %c0_i32_1 : i32, i32, i32
  }
  func.func @transform_4(%arg0: i32) -> (i32, i32, i32) {
    %c0_i32 = arith.constant 0 : i32
    %c0_i32_0 = arith.constant 0 : i32
    %c0_i32_1 = arith.constant 0 : i32
    %c0_i32_2 = arith.constant 0 : i32
    return %c0_i32, %c0_i32_0, %c0_i32_1 : i32, i32, i32
  }
  func.func @transform_5(%arg0: i32) -> (i32, i32, i32) {
    %c0_i32 = arith.constant 0 : i32
    %c0_i32_0 = arith.constant 0 : i32
    %c0_i32_1 = arith.constant 0 : i32
    return %c0_i32, %arg0, %c0_i32_0 : i32, i32, i32
  }
}

</mosaic_0001>

<bundles_post_ra>
// kernel: tpu_custom_call.1
= control target key start
LH: loop header
LB: loop body
LE: loop exit
PB: predicated region body
PF: predicated region fallthrough
CT: control target
= control target key end

     0   :  { %10 = vsyncpa [#allocation3], 0  ;;  %s473_s0 = inlined_call_operand.hbm [shape: f32[16,32], index: 0, kind: input, shape index: {}]   ;;  %s474_s1 = inlined_call_operand.hbm [shape: f32[16,32], index: 1, kind: input, shape index: {}]   ;;  %s475_s2 = inlined_call_operand.hbm [shape: f32[16,32], index: 2, kind: input, shape index: {}]   ;;  %s476_s3 = inlined_call_operand.hbm [shape: f32[3,32,32], index: 3, kind: input, shape index: {}]   ;;  %s477_s4 = inlined_call_operand.vmem [shape: f32[3,1,32], index: 4, kind: input, shape index: {}]   ;;  %s478_s5 = inlined_call_operand.hbm [shape: f32[3,16,32], index: 5, kind: output, shape index: {}]  }
   0x1   :  { %11 = vsyncpa [#allocation6], 0 }
   0x2   :  { %12 = vsyncpa [#allocation9], 0 }
   0x3   :  { %13 = vsyncpa [#allocation4], 0  ;;  %s31_s20 = sshll.u32 %s474_s1, 4  ;;  %s385_s21 = smov [#allocation5]   ;;  %s32_s20 = int_to_ptr.hbm [resolvable:$true] %s31_s20 }
   0x4   :  { %s33_s22 = sshll.u32 %s385_s21, 4  ;;  %s18_s25 = sshll.u32 %s473_s0, 4  ;;  %s34_s22 = int_to_ptr.vmem [resolvable:$true] %s33_s22  ;;  %s19_s25 = int_to_ptr.hbm [resolvable:$true] %s18_s25 }
   0x5   :  { %s386_s26 = smov 128   ;;  %s387_s27 = smov 8  }
   0x6   :  { %39 = dma.hbm_to_vmem [thread:$0]  %s32_s20, 256, %s34_s22, [#allocation6], %s386_s26, %s386_s26, %s387_s27  }
   0x7   :  { %s388_s28 = smov [#allocation2]   ;;  %s44_s1 = sshll.u32 %s475_s2, 4  ;;  %s45_s1 = int_to_ptr.hbm [resolvable:$true] %s44_s1 }
   0x8   :  { %s20_s29 = sshll.u32 %s388_s28, 4  ;;  %s57_s8 = sshll.u32 %s476_s3, 4  ;;  %s21_s29 = int_to_ptr.vmem [resolvable:$true] %s20_s29  ;;  %s58_s8 = int_to_ptr.hbm [resolvable:$true] %s57_s8 }
   0x9   :  { %26 = dma.hbm_to_vmem [thread:$0]  %s19_s25, 256, %s21_s29, [#allocation3], %s386_s26, %s386_s26, %s387_s27  }
   0xa   :  { %s389_s9 = smov [#allocation7]   ;;  %s390_s11 = smov [#allocation8]  }
   0xb   :  { %s46_s10 = sshll.u32 %s389_s9, 4  ;;  %s59_s2 = sshll.u32 %s390_s11, 4  ;;  %s47_s10 = int_to_ptr.vmem [resolvable:$true] %s46_s10  ;;  %s60_s2 = int_to_ptr.vmem [resolvable:$true] %s59_s2 }
   0xc   :  { %52 = dma.hbm_to_vmem [thread:$0]  %s45_s1, 256, %s47_s10, [#allocation6], %s386_s26, %s386_s26, %s387_s27  }
   0xd   :  { %65 = dma.hbm_to_vmem [thread:$0]  %s58_s8, 1536, %s60_s2, [#allocation9], %s386_s26, %s386_s26, %s387_s27  }
   0xe   :  { %377 = dma.done.wait [#allocation3], 256  }
   0xf   :  { %378 = vsyncadd [#allocation3], 4294967040 }
  0x10   :  { %379 = dma.done.wait [#allocation6], 512  }
  0x11   :  { %380 = vsyncadd [#allocation6], 4294966784 }
  0x12   :  { %381 = dma.done.wait [#allocation9], 1536  }
  0x13   :  { %382 = vsyncadd [#allocation9], 4294965760  ;;  %v176_v0 = vld [vmem:[#allocation8 + $0x58] sm:$0xff]  ;;  %v175_v1 = vld [vmem:[#allocation8 + $0x50] sm:$0xff]  ;;  %vm94_vm0 = vcmask 261120   ;;  %s391_s17 = smov [#allocation10]  }
  0x14   :  { %200 = vmatpush.msra.mxu2 %v176_v0  ;;  %v174_v2 = vld [vmem:[#allocation8 + $0x48] sm:$0xff]  ;;  %v132_v3 = vld [vmem:[#allocation8 + $0x38] sm:$0xff]  ;;  %v131_v5 = vld [vmem:[#allocation8 + $0x30] sm:$0xff]  ;;  %s220_s20 = sshll.u32 %s478_s5, 4  ;;  %s221_s20 = int_to_ptr.hbm [resolvable:$true] %s220_s20 }
  0x15   :  { %156 = vmatpush.msra.mxu1 %v132_v3  ;;  %v89_v4 = vld [vmem:[#allocation8 + $0x18] sm:$0xff]  ;;  %v88_v6 = vld [vmem:[#allocation8 + $0x10] sm:$0xff]  ;;  %v130_v7 = vld [vmem:[#allocation8 + $0x28] sm:$0xff] }
  0x16   :  { %201 = vmatpush.msra.mxu2 %v175_v1  ;;  %243 = vmatpush.msra.mxu3 %v89_v4  ;;  %v173_v8 = vld [vmem:[#allocation8 + $0x40] sm:$0xff]  ;;  %v87_v9 = vld [vmem:[#allocation8 + $0x8] sm:$0xff]  ;;  %v170_v10 = vld [vmem:[#allocation7] sm:$0xff] }
  0x17   :  { %157 = vmatpush.msra.mxu1 %v131_v5  ;;  %113 = vmatpush.msra.mxu0 %v89_v4  ;;  %v129_v11 = vld [vmem:[#allocation8 + $0x20] sm:$0xff]  ;;  %v85_v14 = vld [vmem:[#allocation2 + $0x8] sm:$0xff]  ;;  %v84_v15 = vld [vmem:[#allocation2] sm:$0xff] }
  0x18   :  { %202 = vmatpush.msra.mxu2 %v174_v2  ;;  %244 = vmatpush.msra.mxu3 %v88_v6  ;;  %v126_v12 = vld [vmem:[#allocation5] sm:$0xff]  ;;  %v171_v16 = vld [vmem:[#allocation7 + $0x8] sm:$0xff]  ;;  %v127_v17 = vld [vmem:[#allocation5 + $0x8] sm:$0xff] }
  0x19   :  { %158 = vmatpush.msra.mxu1 %v130_v7  ;;  %v86_v13 = vld [vmem:[#allocation8] sm:$0xff]  ;;  %114 = vmatpush.msra.mxu0 %v88_v6  ;;  %v254_v18 = vld [vmem:[%s477_s4 + $0x1] ss:$0 sm:$0xff]  ;;  %v256_v21 = vld [vmem:[%s477_s4] ss:$0 sm:$0xff] }
  0x1a   :  { %203 = vmatpush.msra.mxu2 %v173_v8  ;;  %245 = vmatpush.msra.mxu3 %v87_v9  ;;  %v255_v22 = vld [vmem:[%s477_s4 + $0x2] ss:$0 sm:$0xff]  ;;  %s218_s4 = sshll.u32 %s391_s17, 4  ;;  %s219_s4 = int_to_ptr.vmem [resolvable:$true] %s218_s4 }
  0x1b   :  { %241 = vmatmul.msk.f32.vlgmr.msra.gmra.mxu2 %vm94_vm0, %v170_v10  ;;  %159 = vmatpush.msra.mxu1 %v129_v11 }
  0x1c   :  { %238 = vmatmul.msk.f32.vlgmr.msra.gmra.mxu1 %vm94_vm0, %v126_v12  ;;  %246 = vmatpush.msra.mxu3 %v86_v13 }
  0x1d   :  { %236 = vmatmul.msk.f32.vlgmr.msra.gmra.mxu3 %vm94_vm0, %v85_v14  ;;  %115 = vmatpush.msra.mxu0 %v87_v9 }
  0x1f   :  { %116 = vmatpush.msra.mxu0 %v86_v13 }
  0x20   :  { %235 = vmatmul.msk.f32.vlgmr.msra.gmra.mxu0 %vm94_vm0, %v84_v15 }
  0x23   :  { %242 = vmatmul.msk.f32.gmra.mxu2 %vm94_vm0, %v171_v16 }
  0x24   :  { %239 = vmatmul.msk.f32.gmra.mxu1 %vm94_vm0, %v127_v17 }
  0x99   :  { %v161_v19 = vpop.f32.mrf.mxu1 }
  0x9a   :  { %v162_v20 = vadd.f32 %v254_v18, %v161_v19 }
  0x9c   :  { %168 = vst.msk [vmem:[#allocation10 + $0x10] sm:$0xff] %vm94_vm0, %v162_v20 }
  0x9d   :  { %v118_v23 = vpop.f32.mrf.mxu0 }
  0x9e   :  { %v205_v24 = vpop.f32.mrf.mxu2  ;;  %v119_v25 = vadd.f32 %v256_v21, %v118_v23 }
  0x9f   :  { %v206_v26 = vadd.f32 %v255_v22, %v205_v24 }
  0xa0   :  { %124 = vst.msk [vmem:[#allocation10] sm:$0xff] %vm94_vm0, %v119_v25  ;;  %v121_v27 = vpop.f32.mrf.mxu3 }
  0xa1   :  { %212 = vst.msk [vmem:[#allocation10 + $0x20] sm:$0xff] %vm94_vm0, %v206_v26  ;;  %v122_v28 = vadd.f32 %v256_v21, %v121_v27  ;;  %v164_v29 = vpop.f32.mrf.mxu1 }
  0xa2   :  { %v165_v30 = vadd.f32 %v254_v18, %v164_v29 }
  0xa3   :  { %125 = vst.msk [vmem:[#allocation10 + $0x8] sm:$0xff] %vm94_vm0, %v122_v28 }
  0xa4   :  { %169 = vst.msk [vmem:[#allocation10 + $0x18] sm:$0xff] %vm94_vm0, %v165_v30 }
  0xa6   :  { %v208_v31 = vpop.f32.mrf.mxu2 }
  0xa7   :  { %v209_v32 = vadd.f32 %v255_v22, %v208_v31 }
  0xa9   :  { %213 = vst.msk [vmem:[#allocation10 + $0x28] sm:$0xff] %vm94_vm0, %v209_v32 }
  0xaa   :  { %226 = dma.vmem_to_hbm [thread:$0]  %s219_s4, 768, %s221_s20, [#allocation4], %s386_s26, %s386_s26, %s387_s27  }
  0xab   :  { %383 = dma.done.wait [#allocation4], 768  }
  0xac   :  { %384 = vsyncadd [#allocation4], 4294966528 }
  0xad   :  { %231 = vsyncpa [#allocation3], 1 }
  0xae   :  { %232 = vsyncpa [#allocation6], 1 }
  0xaf   :  { %233 = vsyncpa [#allocation9], 1 }
  0xb0   :  { %234 = vsyncpa [#allocation4], 1 }

</bundles_post_ra>
